<compile_context>
chip_gen: v7x
topology: tpu7x:2x2x1
jax: 0.10.0
libtpu: 0.0.40
codegen_flags: <defaults>
</compile_context>

<pallas_src>
import functools

import jax
import jax.numpy as jnp
from jax import lax
from jax.experimental import pallas as pl
from jax.experimental.pallas import tpu as pltpu


def _lstm_kernel(x_ref, wih_ref, whh_ref, b_ref, out_ref):
    """Runs the full LSTM recurrence for one (batch=1) sequence.

    x_ref   : (T, D)    input sequence
    wih_ref : (D, 4H)   W_ih^T
    whh_ref : (H, 4H)   W_hh^T
    b_ref   : (1, 4H)   b_ih + b_hh
    out_ref : (1, H)    final hidden state
    """
    T, _ = x_ref.shape
    H = out_ref.shape[1]

    # ---- Prologue: hoisted input projection + fused bias for ALL steps ----
    # One (T, D) x (D, 4H) MXU matmul instead of T row-vector matmuls.
    gates_x = (
        jnp.dot(x_ref[...], wih_ref[...], preferred_element_type=jnp.float32)
        + b_ref[...]
    )                                                              # (T, 4H)

    # Keep the recurrent weight and the state in vregs across the unrolled loop.
    whh = whh_ref[...]                                             # (H, 4H)
    h = jnp.zeros((1, H), jnp.float32)                             # clear_states()
    c = jnp.zeros((1, H), jnp.float32)

    # ---- Fully unrolled recurrence (T is small and static) ----
    for t in range(T):
        gates = gates_x[t:t + 1, :] + jnp.dot(
            h, whh, preferred_element_type=jnp.float32)            # (1, 4H)

        # Whole-vreg EUP pushes; slice the gate chunks afterwards.
        sig = jax.nn.sigmoid(gates)
        tnh = jnp.tanh(gates)
        i_g = sig[:, 0 * H:1 * H]
        f_g = sig[:, 1 * H:2 * H]
        g_g = tnh[:, 2 * H:3 * H]
        o_g = sig[:, 3 * H:4 * H]

        c = f_g * c + i_g * g_g
        h = o_g * jnp.tanh(c)

    # Only the final hidden state is ever consumed.
    out_ref[...] = h


@functools.partial(jax.jit, static_argnames=("bb_dim",))
def make_lstm_forward(x, w_ih, w_hh, b_ih, b_hh, *, bb_dim):
    """x: (n_frames, inner_dim) float32.  Returns (bb_dim,) float32."""
    T, D = x.shape
    H = D  # hidden size == input size == inner_dim

    w_ih_t = jnp.transpose(w_ih)                  # (D, 4H)
    w_hh_t = jnp.transpose(w_hh)                  # (H, 4H)
    bias = (b_ih + b_hh).reshape(1, 4 * H)        # (1, 4H)

    vmem = pl.BlockSpec(memory_space=pltpu.MemorySpace.VMEM)

    out = pl.pallas_call(
        _lstm_kernel,
        out_shape=jax.ShapeDtypeStruct((1, H), jnp.float32),
        in_specs=[vmem, vmem, vmem, vmem],
        out_specs=vmem,
    )(x, w_ih_t, w_hh_t, bias)

    # x.view(-1)[-bb_dim:]  == last bb_dim features of the final timestep
    return out[0, H - bb_dim:]


def _reference_lstm(x, w_ih, w_hh, b_ih, b_hh, bb_dim):
    """Pure-JAX reference (same PyTorch LSTM gate math) for a sanity check."""
    H = x.shape[1]

    def step(carry, x_t):
        h, c = carry
        gates = x_t @ w_ih.T + h @ w_hh.T + b_ih + b_hh
        i = jax.nn.sigmoid(gates[0 * H:1 * H])
        f = jax.nn.sigmoid(gates[1 * H:2 * H])
        g = jnp.tanh(gates[2 * H:3 * H])
        o = jax.nn.sigmoid(gates[3 * H:4 * H])
        c = f * c + i * g
        h = o * jnp.tanh(c)
        return (h, c), h

    (_, _), hs = lax.scan(step, (jnp.zeros(H), jnp.zeros(H)), x)
    return hs[-1, H - bb_dim:]


if __name__ == "__main__":
    # Small shapes consistent with the module.
    d_model = 24
    bb_dim = 8
    n_frames = 8
    inner_dim = d_model + bb_dim          # 32 -> 4H = 128 lanes

    key = jax.random.PRNGKey(0)
    kx, k1, k2, k3, k4 = jax.random.split(key, 5)

    # Deterministic parameter init, PyTorch-style U(-1/sqrt(H), 1/sqrt(H)).
    bound = 1.0 / jnp.sqrt(jnp.float32(inner_dim))
    w_ih = jax.random.uniform(k1, (4 * inner_dim, inner_dim),
                              jnp.float32, -bound, bound)
    w_hh = jax.random.uniform(k2, (4 * inner_dim, inner_dim),
                              jnp.float32, -bound, bound)
    b_ih = jax.random.uniform(k3, (4 * inner_dim,), jnp.float32, -bound, bound)
    b_hh = jax.random.uniform(k4, (4 * inner_dim,), jnp.float32, -bound, bound)

    # Input sequence: (n_frames, inner_dim), batch of 1 squeezed out.
    x = jax.random.normal(kx, (n_frames, inner_dim), jnp.float32)

    out = make_lstm_forward(x, w_ih, w_hh, b_ih, b_hh, bb_dim=bb_dim)
    out = jax.block_until_ready(out)

    ref = _reference_lstm(x, w_ih, w_hh, b_ih, b_hh, bb_dim)
    assert out.shape == (bb_dim,)
    assert jnp.allclose(out, ref, atol=1e-5, rtol=1e-5)

    print("KERNEL_OK")
</pallas_src>

<mosaic_0001>
module attributes {stable_mosaic.version = 11 : i64} {
  func.func @_lstm_kernel(%arg0: memref<8x32xf32, #tpu.memory_space<vmem>>, %arg1: memref<32x128xf32, #tpu.memory_space<vmem>>, %arg2: memref<32x128xf32, #tpu.memory_space<vmem>>, %arg3: memref<1x128xf32, #tpu.memory_space<vmem>>, %arg4: memref<1x32xf32, #tpu.memory_space<vmem>>) attributes {dimension_semantics = [], scalar_prefetch = 0 : i64, scratch_operands = 0 : i64, tpu.core_type = #tpu.core_type<tc>} {
    %c0 = arith.constant 0 : index
    %c0_0 = arith.constant 0 : index
    %0 = vector.load %arg0[%c0, %c0_0] : memref<8x32xf32, #tpu.memory_space<vmem>>, vector<8x32xf32>
    %c0_1 = arith.constant 0 : index
    %c0_2 = arith.constant 0 : index
    %1 = vector.load %arg1[%c0_1, %c0_2] : memref<32x128xf32, #tpu.memory_space<vmem>>, vector<32x128xf32>
    %cst = arith.constant dense<0.000000e+00> : vector<8x128xf32>
    %2 = tpu.matmul %0, %1, %cst {dimension_numbers = #tpu.dot_dimension_numbers<[1], [0], [0], [1], [0, 0, 1, 1], [], []>} : vector<8x32xf32>, vector<32x128xf32>, vector<8x128xf32> -> vector<8x128xf32>
    %c0_3 = arith.constant 0 : index
    %c0_4 = arith.constant 0 : index
    %3 = vector.load %arg3[%c0_3, %c0_4] : memref<1x128xf32, #tpu.memory_space<vmem>>, vector<1x128xf32>
    %4 = vector.broadcast %3 : vector<1x128xf32> to vector<8x128xf32>
    %5 = arith.addf %2, %4 : vector<8x128xf32>
    %c0_5 = arith.constant 0 : index
    %c0_6 = arith.constant 0 : index
    %6 = vector.load %arg2[%c0_5, %c0_6] : memref<32x128xf32, #tpu.memory_space<vmem>>, vector<32x128xf32>
    %cst_7 = arith.constant 0.000000e+00 : f32
    %7 = vector.broadcast %cst_7 : f32 to vector<1x32xf32>
    %cst_8 = arith.constant 0.000000e+00 : f32
    %8 = vector.broadcast %cst_8 : f32 to vector<1x32xf32>
    %9 = vector.extract_strided_slice %5 {offsets = [0, 0], sizes = [1, 128], strides = [1, 1]} : vector<8x128xf32> to vector<1x128xf32>
    %cst_9 = arith.constant dense<0.000000e+00> : vector<1x128xf32>
    %10 = tpu.matmul %7, %6, %cst_9 {dimension_numbers = #tpu.dot_dimension_numbers<[1], [0], [0], [1], [0, 0, 1, 1], [], []>} : vector<1x32xf32>, vector<32x128xf32>, vector<1x128xf32> -> vector<1x128xf32>
    %11 = arith.addf %9, %10 : vector<1x128xf32>
    %12 = arith.negf %11 : vector<1x128xf32>
    %13 = math.exp %12 : vector<1x128xf32>
    %cst_10 = arith.constant 1.000000e+00 : f32
    %14 = vector.broadcast %cst_10 : f32 to vector<1x128xf32>
    %15 = arith.addf %14, %13 : vector<1x128xf32>
    %16 = arith.divf %14, %15 : vector<1x128xf32>
    %17 = math.tanh %11 : vector<1x128xf32>
    %18 = vector.extract_strided_slice %16 {offsets = [0, 0], sizes = [1, 32], strides = [1, 1]} : vector<1x128xf32> to vector<1x32xf32>
    %19 = vector.extract_strided_slice %16 {offsets = [0, 32], sizes = [1, 32], strides = [1, 1]} : vector<1x128xf32> to vector<1x32xf32>
    %20 = vector.extract_strided_slice %17 {offsets = [0, 64], sizes = [1, 32], strides = [1, 1]} : vector<1x128xf32> to vector<1x32xf32>
    %21 = vector.extract_strided_slice %16 {offsets = [0, 96], sizes = [1, 32], strides = [1, 1]} : vector<1x128xf32> to vector<1x32xf32>
    %22 = arith.mulf %19, %8 : vector<1x32xf32>
    %23 = arith.mulf %18, %20 : vector<1x32xf32>
    %24 = arith.addf %22, %23 : vector<1x32xf32>
    %25 = math.tanh %24 : vector<1x32xf32>
    %26 = arith.mulf %21, %25 : vector<1x32xf32>
    %27 = vector.extract_strided_slice %5 {offsets = [1, 0], sizes = [1, 128], strides = [1, 1]} : vector<8x128xf32> to vector<1x128xf32>
    %cst_11 = arith.constant dense<0.000000e+00> : vector<1x128xf32>
    %28 = tpu.matmul %26, %6, %cst_11 {dimension_numbers = #tpu.dot_dimension_numbers<[1], [0], [0], [1], [0, 0, 1, 1], [], []>} : vector<1x32xf32>, vector<32x128xf32>, vector<1x128xf32> -> vector<1x128xf32>
    %29 = arith.addf %27, %28 : vector<1x128xf32>
    %30 = arith.negf %29 : vector<1x128xf32>
    %31 = math.exp %30 : vector<1x128xf32>
    %cst_12 = arith.constant 1.000000e+00 : f32
    %32 = vector.broadcast %cst_12 : f32 to vector<1x128xf32>
    %33 = arith.addf %32, %31 : vector<1x128xf32>
    %34 = arith.divf %32, %33 : vector<1x128xf32>
    %35 = math.tanh %29 : vector<1x128xf32>
    %36 = vector.extract_strided_slice %34 {offsets = [0, 0], sizes = [1, 32], strides = [1, 1]} : vector<1x128xf32> to vector<1x32xf32>
    %37 = vector.extract_strided_slice %34 {offsets = [0, 32], sizes = [1, 32], strides = [1, 1]} : vector<1x128xf32> to vector<1x32xf32>
    %38 = vector.extract_strided_slice %35 {offsets = [0, 64], sizes = [1, 32], strides = [1, 1]} : vector<1x128xf32> to vector<1x32xf32>
    %39 = vector.extract_strided_slice %34 {offsets = [0, 96], sizes = [1, 32], strides = [1, 1]} : vector<1x128xf32> to vector<1x32xf32>
    %40 = arith.mulf %37, %24 : vector<1x32xf32>
    %41 = arith.mulf %36, %38 : vector<1x32xf32>
    %42 = arith.addf %40, %41 : vector<1x32xf32>
    %43 = math.tanh %42 : vector<1x32xf32>
    %44 = arith.mulf %39, %43 : vector<1x32xf32>
    %45 = vector.extract_strided_slice %5 {offsets = [2, 0], sizes = [1, 128], strides = [1, 1]} : vector<8x128xf32> to vector<1x128xf32>
    %cst_13 = arith.constant dense<0.000000e+00> : vector<1x128xf32>
    %46 = tpu.matmul %44, %6, %cst_13 {dimension_numbers = #tpu.dot_dimension_numbers<[1], [0], [0], [1], [0, 0, 1, 1], [], []>} : vector<1x32xf32>, vector<32x128xf32>, vector<1x128xf32> -> vector<1x128xf32>
    %47 = arith.addf %45, %46 : vector<1x128xf32>
    %48 = arith.negf %47 : vector<1x128xf32>
    %49 = math.exp %48 : vector<1x128xf32>
    %cst_14 = arith.constant 1.000000e+00 : f32
    %50 = vector.broadcast %cst_14 : f32 to vector<1x128xf32>
    %51 = arith.addf %50, %49 : vector<1x128xf32>
    %52 = arith.divf %50, %51 : vector<1x128xf32>
    %53 = math.tanh %47 : vector<1x128xf32>
    %54 = vector.extract_strided_slice %52 {offsets = [0, 0], sizes = [1, 32], strides = [1, 1]} : vector<1x128xf32> to vector<1x32xf32>
    %55 = vector.extract_strided_slice %52 {offsets = [0, 32], sizes = [1, 32], strides = [1, 1]} : vector<1x128xf32> to vector<1x32xf32>
    %56 = vector.extract_strided_slice %53 {offsets = [0, 64], sizes = [1, 32], strides = [1, 1]} : vector<1x128xf32> to vector<1x32xf32>
    %57 = vector.extract_strided_slice %52 {offsets = [0, 96], sizes = [1, 32], strides = [1, 1]} : vector<1x128xf32> to vector<1x32xf32>
    %58 = arith.mulf %55, %42 : vector<1x32xf32>
    %59 = arith.mulf %54, %56 : vector<1x32xf32>
    %60 = arith.addf %58, %59 : vector<1x32xf32>
    %61 = math.tanh %60 : vector<1x32xf32>
    %62 = arith.mulf %57, %61 : vector<1x32xf32>
    %63 = vector.extract_strided_slice %5 {offsets = [3, 0], sizes = [1, 128], strides = [1, 1]} : vector<8x128xf32> to vector<1x128xf32>
    %cst_15 = arith.constant dense<0.000000e+00> : vector<1x128xf32>
    %64 = tpu.matmul %62, %6, %cst_15 {dimension_numbers = #tpu.dot_dimension_numbers<[1], [0], [0], [1], [0, 0, 1, 1], [], []>} : vector<1x32xf32>, vector<32x128xf32>, vector<1x128xf32> -> vector<1x128xf32>
    %65 = arith.addf %63, %64 : vector<1x128xf32>
    %66 = arith.negf %65 : vector<1x128xf32>
    %67 = math.exp %66 : vector<1x128xf32>
    %cst_16 = arith.constant 1.000000e+00 : f32
    %68 = vector.broadcast %cst_16 : f32 to vector<1x128xf32>
    %69 = arith.addf %68, %67 : vector<1x128xf32>
    %70 = arith.divf %68, %69 : vector<1x128xf32>
    %71 = math.tanh %65 : vector<1x128xf32>
    %72 = vector.extract_strided_slice %70 {offsets = [0, 0], sizes = [1, 32], strides = [1, 1]} : vector<1x128xf32> to vector<1x32xf32>
    %73 = vector.extract_strided_slice %70 {offsets = [0, 32], sizes = [1, 32], strides = [1, 1]} : vector<1x128xf32> to vector<1x32xf32>
    %74 = vector.extract_strided_slice %71 {offsets = [0, 64], sizes = [1, 32], strides = [1, 1]} : vector<1x128xf32> to vector<1x32xf32>
    %75 = vector.extract_strided_slice %70 {offsets = [0, 96], sizes = [1, 32], strides = [1, 1]} : vector<1x128xf32> to vector<1x32xf32>
    %76 = arith.mulf %73, %60 : vector<1x32xf32>
    %77 = arith.mulf %72, %74 : vector<1x32xf32>
    %78 = arith.addf %76, %77 : vector<1x32xf32>
    %79 = math.tanh %78 : vector<1x32xf32>
    %80 = arith.mulf %75, %79 : vector<1x32xf32>
    %81 = vector.extract_strided_slice %5 {offsets = [4, 0], sizes = [1, 128], strides = [1, 1]} : vector<8x128xf32> to vector<1x128xf32>
    %cst_17 = arith.constant dense<0.000000e+00> : vector<1x128xf32>
    %82 = tpu.matmul %80, %6, %cst_17 {dimension_numbers = #tpu.dot_dimension_numbers<[1], [0], [0], [1], [0, 0, 1, 1], [], []>} : vector<1x32xf32>, vector<32x128xf32>, vector<1x128xf32> -> vector<1x128xf32>
    %83 = arith.addf %81, %82 : vector<1x128xf32>
    %84 = arith.negf %83 : vector<1x128xf32>
    %85 = math.exp %84 : vector<1x128xf32>
    %cst_18 = arith.constant 1.000000e+00 : f32
    %86 = vector.broadcast %cst_18 : f32 to vector<1x128xf32>
    %87 = arith.addf %86, %85 : vector<1x128xf32>
    %88 = arith.divf %86, %87 : vector<1x128xf32>
    %89 = math.tanh %83 : vector<1x128xf32>
    %90 = vector.extract_strided_slice %88 {offsets = [0, 0], sizes = [1, 32], strides = [1, 1]} : vector<1x128xf32> to vector<1x32xf32>
    %91 = vector.extract_strided_slice %88 {offsets = [0, 32], sizes = [1, 32], strides = [1, 1]} : vector<1x128xf32> to vector<1x32xf32>
    %92 = vector.extract_strided_slice %89 {offsets = [0, 64], sizes = [1, 32], strides = [1, 1]} : vector<1x128xf32> to vector<1x32xf32>
    %93 = vector.extract_strided_slice %88 {offsets = [0, 96], sizes = [1, 32], strides = [1, 1]} : vector<1x128xf32> to vector<1x32xf32>
    %94 = arith.mulf %91, %78 : vector<1x32xf32>
    %95 = arith.mulf %90, %92 : vector<1x32xf32>
    %96 = arith.addf %94, %95 : vector<1x32xf32>
    %97 = math.tanh %96 : vector<1x32xf32>
    %98 = arith.mulf %93, %97 : vector<1x32xf32>
    %99 = vector.extract_strided_slice %5 {offsets = [5, 0], sizes = [1, 128], strides = [1, 1]} : vector<8x128xf32> to vector<1x128xf32>
    %cst_19 = arith.constant dense<0.000000e+00> : vector<1x128xf32>
    %100 = tpu.matmul %98, %6, %cst_19 {dimension_numbers = #tpu.dot_dimension_numbers<[1], [0], [0], [1], [0, 0, 1, 1], [], []>} : vector<1x32xf32>, vector<32x128xf32>, vector<1x128xf32> -> vector<1x128xf32>
    %101 = arith.addf %99, %100 : vector<1x128xf32>
    %102 = arith.negf %101 : vector<1x128xf32>
    %103 = math.exp %102 : vector<1x128xf32>
    %cst_20 = arith.constant 1.000000e+00 : f32
    %104 = vector.broadcast %cst_20 : f32 to vector<1x128xf32>
    %105 = arith.addf %104, %103 : vector<1x128xf32>
    %106 = arith.divf %104, %105 : vector<1x128xf32>
    %107 = math.tanh %101 : vector<1x128xf32>
    %108 = vector.extract_strided_slice %106 {offsets = [0, 0], sizes = [1, 32], strides = [1, 1]} : vector<1x128xf32> to vector<1x32xf32>
    %109 = vector.extract_strided_slice %106 {offsets = [0, 32], sizes = [1, 32], strides = [1, 1]} : vector<1x128xf32> to vector<1x32xf32>
    %110 = vector.extract_strided_slice %107 {offsets = [0, 64], sizes = [1, 32], strides = [1, 1]} : vector<1x128xf32> to vector<1x32xf32>
    %111 = vector.extract_strided_slice %106 {offsets = [0, 96], sizes = [1, 32], strides = [1, 1]} : vector<1x128xf32> to vector<1x32xf32>
    %112 = arith.mulf %109, %96 : vector<1x32xf32>
    %113 = arith.mulf %108, %110 : vector<1x32xf32>
    %114 = arith.addf %112, %113 : vector<1x32xf32>
    %115 = math.tanh %114 : vector<1x32xf32>
    %116 = arith.mulf %111, %115 : vector<1x32xf32>
    %117 = vector.extract_strided_slice %5 {offsets = [6, 0], sizes = [1, 128], strides = [1, 1]} : vector<8x128xf32> to vector<1x128xf32>
    %cst_21 = arith.constant dense<0.000000e+00> : vector<1x128xf32>
    %118 = tpu.matmul %116, %6, %cst_21 {dimension_numbers = #tpu.dot_dimension_numbers<[1], [0], [0], [1], [0, 0, 1, 1], [], []>} : vector<1x32xf32>, vector<32x128xf32>, vector<1x128xf32> -> vector<1x128xf32>
    %119 = arith.addf %117, %118 : vector<1x128xf32>
    %120 = arith.negf %119 : vector<1x128xf32>
    %121 = math.exp %120 : vector<1x128xf32>
    %cst_22 = arith.constant 1.000000e+00 : f32
    %122 = vector.broadcast %cst_22 : f32 to vector<1x128xf32>
    %123 = arith.addf %122, %121 : vector<1x128xf32>
    %124 = arith.divf %122, %123 : vector<1x128xf32>
    %125 = math.tanh %119 : vector<1x128xf32>
    %126 = vector.extract_strided_slice %124 {offsets = [0, 0], sizes = [1, 32], strides = [1, 1]} : vector<1x128xf32> to vector<1x32xf32>
    %127 = vector.extract_strided_slice %124 {offsets = [0, 32], sizes = [1, 32], strides = [1, 1]} : vector<1x128xf32> to vector<1x32xf32>
    %128 = vector.extract_strided_slice %125 {offsets = [0, 64], sizes = [1, 32], strides = [1, 1]} : vector<1x128xf32> to vector<1x32xf32>
    %129 = vector.extract_strided_slice %124 {offsets = [0, 96], sizes = [1, 32], strides = [1, 1]} : vector<1x128xf32> to vector<1x32xf32>
    %130 = arith.mulf %127, %114 : vector<1x32xf32>
    %131 = arith.mulf %126, %128 : vector<1x32xf32>
    %132 = arith.addf %130, %131 : vector<1x32xf32>
    %133 = math.tanh %132 : vector<1x32xf32>
    %134 = arith.mulf %129, %133 : vector<1x32xf32>
    %135 = vector.extract_strided_slice %5 {offsets = [7, 0], sizes = [1, 128], strides = [1, 1]} : vector<8x128xf32> to vector<1x128xf32>
    %cst_23 = arith.constant dense<0.000000e+00> : vector<1x128xf32>
    %136 = tpu.matmul %134, %6, %cst_23 {dimension_numbers = #tpu.dot_dimension_numbers<[1], [0], [0], [1], [0, 0, 1, 1], [], []>} : vector<1x32xf32>, vector<32x128xf32>, vector<1x128xf32> -> vector<1x128xf32>
    %137 = arith.addf %135, %136 : vector<1x128xf32>
    %138 = arith.negf %137 : vector<1x128xf32>
    %139 = math.exp %138 : vector<1x128xf32>
    %cst_24 = arith.constant 1.000000e+00 : f32
    %140 = vector.broadcast %cst_24 : f32 to vector<1x128xf32>
    %141 = arith.addf %140, %139 : vector<1x128xf32>
    %142 = arith.divf %140, %141 : vector<1x128xf32>
    %143 = math.tanh %137 : vector<1x128xf32>
    %144 = vector.extract_strided_slice %142 {offsets = [0, 0], sizes = [1, 32], strides = [1, 1]} : vector<1x128xf32> to vector<1x32xf32>
    %145 = vector.extract_strided_slice %142 {offsets = [0, 32], sizes = [1, 32], strides = [1, 1]} : vector<1x128xf32> to vector<1x32xf32>
    %146 = vector.extract_strided_slice %143 {offsets = [0, 64], sizes = [1, 32], strides = [1, 1]} : vector<1x128xf32> to vector<1x32xf32>
    %147 = vector.extract_strided_slice %142 {offsets = [0, 96], sizes = [1, 32], strides = [1, 1]} : vector<1x128xf32> to vector<1x32xf32>
    %148 = arith.mulf %145, %132 : vector<1x32xf32>
    %149 = arith.mulf %144, %146 : vector<1x32xf32>
    %150 = arith.addf %148, %149 : vector<1x32xf32>
    %151 = math.tanh %150 : vector<1x32xf32>
    %152 = arith.mulf %147, %151 : vector<1x32xf32>
    %c0_25 = arith.constant 0 : index
    %c0_26 = arith.constant 0 : index
    %153 = vector.load %arg4[%c0_25, %c0_26] : memref<1x32xf32, #tpu.memory_space<vmem>>, vector<1x32xf32>
    tpu.vector_store %arg4[%c0_25, %c0_26], %152 {strides = array<i32>} : memref<1x32xf32, #tpu.memory_space<vmem>>, vector<1x32xf32>,
    return
  }
}

</mosaic_0001>

<bundles_post_ra>
// kernel: make_lstm_forward.1
= control target key start
LH: loop header
LB: loop body
LE: loop exit
PB: predicated region body
PF: predicated region fallthrough
CT: control target
= control target key end

     0   :  { %9 = vsyncpa [#allocation3], 0  ;;  %s1503_s0 = inlined_call_operand.vmem [shape: f32[8,32], index: 0, kind: input, shape index: {}]   ;;  %s1504_s1 = inlined_call_operand.hbm [shape: f32[32,128], index: 1, kind: input, shape index: {}]   ;;  %s1505_s2 = inlined_call_operand.hbm [shape: f32[32,128], index: 2, kind: input, shape index: {}]   ;;  %s1506_s3 = inlined_call_operand.vmem [shape: f32[1,128], index: 3, kind: input, shape index: {}]   ;;  %s1507_s4 = inlined_call_operand.vmem [shape: f32[1,32], index: 4, kind: output, shape index: {}]  }
   0x1   :  { %10 = vsyncpa [#allocation5], 0  ;;  %s1329_s15 = smov [#allocation2]   ;;  %s1281_s19 = scalar_lea.hbm %s1504_s1, 512 }
   0x2   :  { %s18_s16 = sshll.u32 %s1329_s15, 4  ;;  %p1282_p0 = scmp.ne.s32.totalorder %s1504_s1, %s1281_s19  ;;  %s19_s16 = int_to_ptr.vmem [resolvable:$true] %s18_s16 }
   0x3   :  { %p1285_p1 = scmp.lt.u32.totalorder %s1281_s19, %s1504_s1 }
   0x5   :  { %p1287_p2 = pnand %p1285_p1, %p1282_p0 }
   0x7   :  { %1290 = shalt.err (!%p1287_p2)
}
   0x8   :  { %s1291_s24 = scalar_lea.vmem %s19_s16, 512  ;;  %p1296_p4 = scmp.lt.s32.totalorder %s19_s16, %s19_s16 }
   0x9   :  { %p1292_p3 = scmp.ne.s32.totalorder %s19_s16, %s1291_s24  ;;  %p1297_p5 = scmp.lt.s32.totalorder %s1291_s24, %s1291_s24 }
   0xb   :  { %p1298_p6 = por %p1297_p5, %p1296_p4 }
   0xd   :  { %p1299_p7 = pnand %p1298_p6, %p1292_p3 }
   0xf   :  { %1302 = shalt.err (!%p1299_p7)
}
  0x10   :  { %s1330_s25 = smov 128   ;;  %s1331_s26 = smov 8  }
  0x11   :  { %24 = dma.hbm_to_vmem [thread:$0]  %s1504_s1, 512, %s19_s16, [#allocation3], %s1330_s25, %s1330_s25, %s1331_s26  }
  0x12   :  { %s1332_s29 = smov [#allocation4]   ;;  %s1303_s7 = scalar_lea.hbm %s1505_s2, 512 }
  0x13   :  { %s30_s30 = sshll.u32 %s1332_s29, 4  ;;  %p1304_p8 = scmp.ne.s32.totalorder %s1505_s2, %s1303_s7  ;;  %s31_s30 = int_to_ptr.vmem [resolvable:$true] %s30_s30 }
  0x14   :  { %p1307_p9 = scmp.lt.u32.totalorder %s1303_s7, %s1505_s2 }
  0x16   :  { %p1309_p10 = pnand %p1307_p9, %p1304_p8 }
  0x18   :  { %1312 = shalt.err (!%p1309_p10)
}
  0x19   :  { %s1313_s12 = scalar_lea.vmem %s31_s30, 512  ;;  %p1318_p12 = scmp.lt.s32.totalorder %s31_s30, %s31_s30 }
  0x1a   :  { %p1314_p11 = scmp.ne.s32.totalorder %s31_s30, %s1313_s12  ;;  %p1319_p13 = scmp.lt.s32.totalorder %s1313_s12, %s1313_s12 }
  0x1c   :  { %p1320_p0 = por %p1319_p13, %p1318_p12 }
  0x1e   :  { %p1321_p1 = pnand %p1320_p0, %p1314_p11 }
  0x20   :  { %1324 = shalt.err (!%p1321_p1)
}
  0x21   :  { %36 = dma.hbm_to_vmem [thread:$0]  %s1505_s2, 512, %s31_s30, [#allocation5], %s1330_s25, %s1330_s25, %s1331_s26  }
  0x22   :  { %1325 = dma.done.wait [#allocation3], 512  }
  0x23   :  { %1326 = vsyncadd [#allocation3], 4294966784 }
  0x24   :  { %1327 = dma.done.wait [#allocation5], 512  }
  0x25   :  { %1328 = vsyncadd [#allocation5], 4294966784  ;;  %v1333_v0 = vmov 0.0|0.0   ;;  %vm1334_vm0 = vmmov 0   ;;  %v1335_v1 = vmov 0.0   ;;  %v46_v2 = vld [vmem:[#allocation2] sm:$0xff] }
  0x26   :  { %1154 = vmatprep.subr.bf16.mxu0 %v1333_v0  ;;  %1160 = vmatprep.subr.bf16.mxu1 %v1333_v0  ;;  %v47_v3 = vld [vmem:[#allocation2 + $0x8] sm:$0xff]  ;;  %v131_v4 = vld [vmem:[#allocation4] sm:$0xff]  ;;  %v48_v7 = vld [vmem:[#allocation2 + $0x10] sm:$0xff]  ;;  %vm57_vm1 = vcmask 261120   ;;  %s1336_s16 = smov 64   ;;  %vm985_vm2 = vcmask 261127  }
  0x27   :  { %1063 = vmatprep.mubr.msk.f32.mxu0 %vm1334_vm0, %v1335_v1  ;;  %1074 = vmatprep.mubr.msk.f32.mxu1 %vm1334_vm0, %v1335_v1  ;;  %v1155_v5 = vpack.c.bf16 %v47_v3, %v46_v2  ;;  %v132_v6 = vld [vmem:[#allocation4 + $0x8] sm:$0xff]  ;;  %v49_v8 = vld [vmem:[#allocation2 + $0x18] sm:$0xff]  ;;  %v133_v10 = vld [vmem:[#allocation4 + $0x10] sm:$0xff] }
  0x28   :  { %v1393_v9 = vpack.c.bf16 %v132_v6, %v131_v4  ;;  %v134_v11 = vld [vmem:[#allocation4 + $0x18] sm:$0xff]  ;;  %v1158_v12 = vpack.c.bf16 %v49_v8, %v48_v7  ;;  %v45_v14 = vld [vmem:[%s1503_s0] sm:$0xff] }
  0x29   :  { %1156 = vmatpush3.bf16.msra.mxu0 %v1155_v5  ;;  %v1397_v13 = vpack.c.bf16 %v134_v11, %v133_v10  ;;  %v993_v15 = vld [vmem:[%s1506_s3] ss:$0 sm:$0xff]  ;;  %s1337_s3 = smov 32  }
  0x2a   :  { %1162 = vmatpush3.bf16.msra.mxu1 %v1393_v9  ;;  %1157 = vmatprep.subr.bf16.mxu0 %v1333_v0 }
  0x2b   :  { %1163 = vmatprep.subr.bf16.mxu1 %v1333_v0 }
  0x2d   :  { %1159 = vmatpush3.bf16.msra.mxu0 %v1158_v12 }
  0x2e   :  { %1165 = vmatpush3.bf16.msra.mxu1 %v1397_v13  ;;  %1166 = vmatprep.subr.bf16.mxu0 %v1333_v0 }
  0x2f   :  { %1172 = vmatprep.subr.bf16.mxu1 %v1333_v0 }
  0x30   :  { %1064 = vmatmul.mubr.msk.f32.vlgmr.msra.gmra.mrb[0].mxu0 %vm57_vm1, %v45_v14 }
  0x31   :  { %1075 = vmatmul.mubr.f32.vlgmr.msra.gmra.mrb[0].mxu1 %v1335_v1  ;;  %1168 = vmatpush3.bf16.msra.mxu0 %v1393_v9 }
  0x32   :  { %1169 = vmatprep.subr.bf16.mxu0 %v1333_v0  ;;  %1085 = vmatprep.mubr.msk.f32.mxu0 %vm1334_vm0, %v1335_v1 }
  0x33   :  { %1174 = vmatpush3.bf16.msra.mxu1 %v1393_v9  ;;  %1096 = vmatprep.mubr.msk.f32.mxu1 %vm1334_vm0, %v1335_v1 }
  0x34   :  { %1175 = vmatprep.subr.bf16.mxu1 %v1333_v0 }
  0x35   :  { %1171 = vmatpush3.bf16.msra.mxu0 %v1397_v13 }
  0x36   :  { %1178 = vmatprep.subr.bf16.mxu0 %v1333_v0 }
  0x37   :  { %1177 = vmatpush3.bf16.msra.mxu1 %v1397_v13 }
  0x38   :  { %1184 = vmatprep.subr.bf16.mxu1 %v1333_v0 }
 0x103   :  { %v127_v16 = vpop.f32.mrb[0].mxu0 }
 0x104   :  { %v1423_v17 = vadd.f32 %v993_v15, %v127_v16  ;;  %v1065_v18 = vpop.f32.mrb[1].mxu0  ;;  %v204_v19 = vpop.f32.mrb[0].mxu1 }
 0x105   :  { %v1076_v20 = vpop.f32.mrb[1].mxu1 }
 0x106   :  { %v208_v21 = vadd.f32 %v204_v19, %v1423_v17 }
 0x108   :  { %1217 = vtanh.f32 %v208_v21  ;;  %v995_v23 = vmul.f32 -1.442695, %v208_v21 }
 0x10a   :  { %1219 = vpow2.f32 %v995_v23 }
 0x112   :  { %v1218_v22 = vpop.eup %1217 }
 0x113   :  { %218 = vrot.lane.b32.xlu0 %v1218_v22, %s1336_s16 }
 0x114   :  { %v1220_v24 = vpop.eup %1219 }
 0x115   :  { %v212_v25 = vadd.f32 1.0, %v1220_v24 }
 0x117   :  { %1221 = vrcp.f32 %v212_v25 }
 0x121   :  { %v1222_v26 = vpop.eup %1221 }
 0x122   :  { %v216_v29 = vmul.f32 0.0, %v1222_v26 }
 0x185   :  { %v219_v27 = vpop.permute.xlu0 %218 }
 0x186   :  { %v221_v28 = vmul.f32 %v1222_v26, %v219_v27 }
 0x188   :  { %223 = vrot.lane.b32.xlu0 %v221_v28, %s1337_s3 }
 0x1fa   :  { %v224_v30 = vpop.permute.xlu0 %223 }
 0x1fb   :  { %v226_v31 = vadd.f32 %v224_v30, %v216_v29 }
 0x1fd   :  { %1223 = vtanh.f32 %v226_v31  ;;  %v320_v47 = vrot.slane %v226_v31, 7 }
 0x207   :  { %v1224_v32 = vpop.eup %1223 }
 0x208   :  { %229 = vrot.lane.b32.xlu1 %v1224_v32, %s1336_s16 }
 0x27a   :  { %v230_v33 = vpop.permute.xlu1 %229 }
 0x27b   :  { %v232_v34 = vmul.f32 %v1222_v26, %v230_v33 }
 0x27d   :  { %234 = vrot.lane.b32.xlu1 %v232_v34, %s1337_s3 }
 0x2ef   :  { %v235_v35 = vpop.permute.xlu1 %234 }
 0x2f0   :  { %1086 = vmatmul.mubr.msk.f32.vlgmr.msra.gmra.mrb[2].mxu0 %vm57_vm1, %v235_v35 }
 0x2f1   :  { %1180 = vmatpush3.bf16.msra.mxu0 %v1393_v9  ;;  %1107 = vmatprep.mubr.msk.f32.mxu0 %vm1334_vm0, %v1335_v1 }
 0x2f2   :  { %1181 = vmatprep.subr.bf16.mxu0 %v1333_v0 }
 0x2f5   :  { %1183 = vmatpush3.bf16.msra.mxu0 %v1397_v13 }
 0x2f6   :  { %1190 = vmatprep.subr.bf16.mxu0 %v1333_v0 }
 0x3c3   :  { %v304_v36 = vpop.f32.mrb[2].mxu0 }
 0x3c4   :  { %v309_v37 = vrot.slane %v304_v36, 7  ;;  %v1087_v38 = vpop.f32.mrb[3].mxu0 }
 0x3c6   :  { %v311_v39 = vadd.f32 %v309_v37, %v1423_v17 }
 0x3c8   :  { %1225 = vtanh.f32 %v311_v39  ;;  %v997_v41 = vmul.f32 -1.442695, %v311_v39 }
 0x3ca   :  { %1227 = vpow2.f32 %v997_v41 }
 0x3d2   :  { %v1226_v40 = vpop.eup %1225 }
 0x3d3   :  { %324 = vrot.lane.b32.xlu0 %v1226_v40, %s1336_s16 }
 0x3d4   :  { %v1228_v42 = vpop.eup %1227 }
 0x3d5   :  { %v315_v43 = vadd.f32 1.0, %v1228_v42 }
 0x3d7   :  { %1229 = vrcp.f32 %v315_v43 }
 0x3e1   :  { %v1230_v44 = vpop.eup %1229 }
 0x3e2   :  { %v322_v48 = vmul.f32 %v1230_v44, %v320_v47 }
 0x445   :  { %v325_v45 = vpop.permute.xlu0 %324 }
 0x446   :  { %v327_v46 = vmul.f32 %v1230_v44, %v325_v45 }
 0x448   :  { %329 = vrot.lane.b32.xlu1 %v327_v46, %s1337_s3 }
 0x4ba   :  { %v330_v49 = vpop.permute.xlu1 %329 }
 0x4bb   :  { %v332_v50 = vadd.f32 %v330_v49, %v322_v48 }
 0x4bd   :  { %1231 = vtanh.f32 %v332_v50  ;;  %v427_v5 = vrot.slane %v332_v50, 7 }
 0x4c7   :  { %v1232_v51 = vpop.eup %1231 }
 0x4c8   :  { %335 = vrot.lane.b32.xlu0 %v1232_v51, %s1336_s16 }
 0x53a   :  { %v336_v52 = vpop.permute.xlu0 %335 }
 0x53b   :  { %v338_v53 = vmul.f32 %v1230_v44, %v336_v52 }
 0x53d   :  { %v340_v54 = vrot.slane %v338_v53, 1 }
 0x53f   :  { %341 = vrot.lane.b32.xlu1 %v340_v54, %s1337_s3 }
 0x5b1   :  { %v342_v55 = vpop.permute.xlu1 %341 }
 0x5b2   :  { %1097 = vmatmul.mubr.msk.f32.vlgmr.msra.gmra.mrb[2].mxu1 %vm57_vm1, %v342_v55 }
 0x5b3   :  { %1186 = vmatpush3.bf16.msra.mxu1 %v1393_v9  ;;  %1118 = vmatprep.mubr.msk.f32.mxu1 %vm1334_vm0, %v1335_v1 }
 0x5b4   :  { %1187 = vmatprep.subr.bf16.mxu1 %v1333_v0 }
 0x5b7   :  { %1189 = vmatpush3.bf16.msra.mxu1 %v1397_v13 }
 0x5b8   :  { %1196 = vmatprep.subr.bf16.mxu1 %v1333_v0 }
 0x685   :  { %v411_v56 = vpop.f32.mrb[2].mxu1 }
 0x686   :  { %v416_v57 = vrot.slane %v411_v56, 6  ;;  %v1098_v58 = vpop.f32.mrb[3].mxu1 }
 0x688   :  { %v418_v59 = vadd.f32 %v416_v57, %v1423_v17 }
 0x68a   :  { %1233 = vtanh.f32 %v418_v59  ;;  %v999_v61 = vmul.f32 -1.442695, %v418_v59 }
 0x68c   :  { %1235 = vpow2.f32 %v999_v61 }
 0x694   :  { %v1234_v60 = vpop.eup %1233 }
 0x695   :  { %431 = vrot.lane.b32.xlu0 %v1234_v60, %s1336_s16 }
 0x696   :  { %v1236_v62 = vpop.eup %1235 }
 0x697   :  { %v422_v63 = vadd.f32 1.0, %v1236_v62 }
 0x699   :  { %1237 = vrcp.f32 %v422_v63 }
 0x6a3   :  { %v1238_v2 = vpop.eup %1237 }
 0x6a4   :  { %v429_v6 = vmul.f32 %v1238_v2, %v427_v5 }
 0x707   :  { %v432_v3 = vpop.permute.xlu0 %431 }
 0x708   :  { %v434_v4 = vmul.f32 %v1238_v2, %v432_v3 }
 0x70a   :  { %436 = vrot.lane.b32.xlu1 %v434_v4, %s1337_s3 }
 0x77c   :  { %v437_v7 = vpop.permute.xlu1 %436 }
 0x77d   :  { %v439_v8 = vadd.f32 %v437_v7, %v429_v6 }
 0x77f   :  { %1239 = vtanh.f32 %v439_v8  ;;  %v534_v28 = vrot.slane %v439_v8, 7 }
 0x789   :  { %v1240_v10 = vpop.eup %1239 }
 0x78a   :  { %442 = vrot.lane.b32.xlu0 %v1240_v10, %s1336_s16 }
 0x7fc   :  { %v443_v11 = vpop.permute.xlu0 %442 }
 0x7fd   :  { %v445_v12 = vmul.f32 %v1238_v2, %v443_v11 }
 0x7ff   :  { %v447_v14 = vrot.slane %v445_v12, 2 }
 0x801   :  { %448 = vrot.lane.b32.xlu1 %v447_v14, %s1337_s3 }
 0x873   :  { %v449_v15 = vpop.permute.xlu1 %448 }
 0x874   :  { %1108 = vmatmul.mubr.msk.f32.vlgmr.msra.gmra.mrb[4].mxu0 %vm57_vm1, %v449_v15 }
 0x875   :  { %1192 = vmatpush3.bf16.msra.mxu0 %v1393_v9  ;;  %1129 = vmatprep.mubr.msk.f32.mxu0 %vm1334_vm0, %v1335_v1 }
 0x876   :  { %1193 = vmatprep.subr.bf16.mxu0 %v1333_v0 }
 0x879   :  { %1195 = vmatpush3.bf16.msra.mxu0 %v1397_v13 }
 0x87a   :  { %1202 = vmatprep.subr.bf16.mxu0 %v1333_v0 }
 0x947   :  { %v518_v16 = vpop.f32.mrb[4].mxu0 }
 0x948   :  { %v523_v18 = vrot.slane %v518_v16, 5  ;;  %v1109_v19 = vpop.f32.mrb[5].mxu0 }
 0x94a   :  { %v525_v20 = vadd.f32 %v523_v18, %v1423_v17 }
 0x94c   :  { %1241 = vtanh.f32 %v525_v20  ;;  %v1001_v22 = vmul.f32 -1.442695, %v525_v20 }
 0x94e   :  { %1243 = vpow2.f32 %v1001_v22 }
 0x956   :  { %v1242_v21 = vpop.eup %1241 }
 0x957   :  { %538 = vrot.lane.b32.xlu0 %v1242_v21, %s1336_s16 }
 0x958   :  { %v1244_v23 = vpop.eup %1243 }
 0x959   :  { %v529_v24 = vadd.f32 1.0, %v1244_v23 }
 0x95b   :  { %1245 = vrcp.f32 %v529_v24 }
 0x965   :  { %v1246_v25 = vpop.eup %1245 }
 0x966   :  { %v536_v29 = vmul.f32 %v1246_v25, %v534_v28 }
 0x9c9   :  { %v539_v26 = vpop.permute.xlu0 %538 }
 0x9ca   :  { %v541_v27 = vmul.f32 %v1246_v25, %v539_v26 }
 0x9cc   :  { %543 = vrot.lane.b32.xlu1 %v541_v27, %s1337_s3 }
 0xa3e   :  { %v544_v30 = vpop.permute.xlu1 %543 }
 0xa3f   :  { %v546_v31 = vadd.f32 %v544_v30, %v536_v29 }
 0xa41   :  { %1247 = vtanh.f32 %v546_v31  ;;  %v641_v48 = vrot.slane %v546_v31, 7 }
 0xa4b   :  { %v1248_v32 = vpop.eup %1247 }
 0xa4c   :  { %549 = vrot.lane.b32.xlu0 %v1248_v32, %s1336_s16 }
 0xabe   :  { %v550_v33 = vpop.permute.xlu0 %549 }
 0xabf   :  { %v552_v34 = vmul.f32 %v1246_v25, %v550_v33 }
 0xac1   :  { %v554_v35 = vrot.slane %v552_v34, 3 }
 0xac3   :  { %555 = vrot.lane.b32.xlu1 %v554_v35, %s1337_s3 }
 0xb35   :  { %v556_v36 = vpop.permute.xlu1 %555 }
 0xb36   :  { %1119 = vmatmul.mubr.msk.f32.vlgmr.msra.gmra.mrb[4].mxu1 %vm57_vm1, %v556_v36 }
 0xb37   :  { %1198 = vmatpush3.bf16.msra.mxu1 %v1393_v9  ;;  %1140 = vmatprep.mubr.msk.f32.mxu1 %vm1334_vm0, %v1335_v1 }
 0xb38   :  { %1199 = vmatprep.subr.bf16.mxu1 %v1333_v0 }
 0xb3b   :  { %1201 = vmatpush3.bf16.msra.mxu1 %v1397_v13 }
 0xc09   :  { %v625_v37 = vpop.f32.mrb[4].mxu1 }
 0xc0a   :  { %v630_v38 = vrot.slane %v625_v37, 4  ;;  %v1120_v39 = vpop.f32.mrb[5].mxu1 }
 0xc0c   :  { %v632_v40 = vadd.f32 %v630_v38, %v1423_v17 }
 0xc0e   :  { %1249 = vtanh.f32 %v632_v40  ;;  %v1003_v42 = vmul.f32 -1.442695, %v632_v40 }
 0xc10   :  { %1251 = vpow2.f32 %v1003_v42 }
 0xc18   :  { %v1250_v41 = vpop.eup %1249 }
 0xc19   :  { %645 = vrot.lane.b32.xlu0 %v1250_v41, %s1336_s16 }
 0xc1a   :  { %v1252_v43 = vpop.eup %1251 }
 0xc1b   :  { %v636_v44 = vadd.f32 1.0, %v1252_v43 }
 0xc1d   :  { %1253 = vrcp.f32 %v636_v44 }
 0xc27   :  { %v1254_v45 = vpop.eup %1253 }
 0xc28   :  { %v643_v49 = vmul.f32 %v1254_v45, %v641_v48 }
 0xc8b   :  { %v646_v46 = vpop.permute.xlu0 %645 }
 0xc8c   :  { %v648_v47 = vmul.f32 %v1254_v45, %v646_v46 }
 0xc8e   :  { %650 = vrot.lane.b32.xlu1 %v648_v47, %s1337_s3 }
 0xd00   :  { %v651_v50 = vpop.permute.xlu1 %650 }
 0xd01   :  { %v653_v51 = vadd.f32 %v651_v50, %v643_v49 }
 0xd03   :  { %1255 = vtanh.f32 %v653_v51 }
 0xd0d   :  { %v1256_v52 = vpop.eup %1255 }
 0xd0e   :  { %656 = vrot.lane.b32.xlu0 %v1256_v52, %s1336_s16 }
 0xd80   :  { %v657_v53 = vpop.permute.xlu0 %656 }
 0xd81   :  { %v659_v54 = vmul.f32 %v1254_v45, %v657_v53 }
 0xd83   :  { %v661_v55 = vrot.slane %v659_v54, 4 }
 0xd85   :  { %662 = vrot.lane.b32.xlu1 %v661_v55, %s1337_s3 }
 0xdf7   :  { %v663_v56 = vpop.permute.xlu1 %662 }
 0xdf8   :  { %1130 = vmatmul.mubr.msk.f32.vlgmr.msra.gmra.mrb[6].mxu0 %vm57_vm1, %v663_v56 }
 0xdf9   :  { %1204 = vmatpush3.bf16.msra.mxu0 %v1393_v9  ;;  %1151 = vmatprep.mubr.msk.f32.mxu0 %vm1334_vm0, %v1335_v1 }
 0xdfa   :  { %1205 = vmatprep.subr.bf16.mxu0 %v1333_v0  ;;  %v748_v0 = vrot.slane %v653_v51, 7 }
 0xdfd   :  { %1207 = vmatpush3.bf16.msra.mxu0 %v1397_v13 }
 0xecb   :  { %v732_v57 = vpop.f32.mrb[6].mxu0 }
 0xecc   :  { %v737_v58 = vrot.slane %v732_v57, 3  ;;  %v1131_v59 = vpop.f32.mrb[7].mxu0 }
 0xece   :  { %v739_v60 = vadd.f32 %v737_v58, %v1423_v17 }
 0xed0   :  { %1257 = vtanh.f32 %v739_v60  ;;  %v1005_v62 = vmul.f32 -1.442695, %v739_v60 }
 0xed2   :  { %1259 = vpow2.f32 %v1005_v62 }
 0xeda   :  { %v1258_v61 = vpop.eup %1257 }
 0xedb   :  { %752 = vrot.lane.b32.xlu0 %v1258_v61, %s1336_s16 }
 0xedc   :  { %v1260_v63 = vpop.eup %1259 }
 0xedd   :  { %v743_v9 = vadd.f32 1.0, %v1260_v63 }
 0xedf   :  { %1261 = vrcp.f32 %v743_v9 }
 0xee9   :  { %v1262_v2 = vpop.eup %1261 }
 0xeea   :  { %v750_v13 = vmul.f32 %v1262_v2, %v748_v0 }
 0xf4d   :  { %v753_v1 = vpop.permute.xlu0 %752 }
 0xf4e   :  { %v755_v3 = vmul.f32 %v1262_v2, %v753_v1 }
 0xf50   :  { %757 = vrot.lane.b32.xlu1 %v755_v3, %s1337_s3 }
 0xfc2   :  { %v758_v4 = vpop.permute.xlu1 %757 }
 0xfc3   :  { %v760_v5 = vadd.f32 %v758_v4, %v750_v13 }
 0xfc5   :  { %1263 = vtanh.f32 %v760_v5  ;;  %v855_v25 = vrot.slane %v760_v5, 7 }
 0xfcf   :  { %v1264_v6 = vpop.eup %1263 }
 0xfd0   :  { %763 = vrot.lane.b32.xlu0 %v1264_v6, %s1336_s16 }
0x1042   :  { %v764_v7 = vpop.permute.xlu0 %763 }
0x1043   :  { %v766_v8 = vmul.f32 %v1262_v2, %v764_v7 }
0x1045   :  { %v768_v10 = vrot.slane %v766_v8, 5 }
0x1047   :  { %769 = vrot.lane.b32.xlu1 %v768_v10, %s1337_s3 }
0x10b9   :  { %v770_v11 = vpop.permute.xlu1 %769 }
0x10ba   :  { %1141 = vmatmul.mubr.msk.f32.vlgmr.msra.gmra.mrb[6].mxu1 %vm57_vm1, %v770_v11 }
0x118d   :  { %v839_v12 = vpop.f32.mrb[6].mxu1 }
0x118e   :  { %v844_v14 = vrot.slane %v839_v12, 2  ;;  %v1142_v15 = vpop.f32.mrb[7].mxu1 }
0x1190   :  { %v846_v16 = vadd.f32 %v844_v14, %v1423_v17 }
0x1192   :  { %1265 = vtanh.f32 %v846_v16  ;;  %v1007_v19 = vmul.f32 -1.442695, %v846_v16 }
0x1194   :  { %1267 = vpow2.f32 %v1007_v19 }
0x119c   :  { %v1266_v18 = vpop.eup %1265 }
0x119d   :  { %859 = vrot.lane.b32.xlu0 %v1266_v18, %s1336_s16 }
0x119e   :  { %v1268_v20 = vpop.eup %1267 }
0x119f   :  { %v850_v21 = vadd.f32 1.0, %v1268_v20 }
0x11a1   :  { %1269 = vrcp.f32 %v850_v21 }
0x11ab   :  { %v1270_v22 = vpop.eup %1269 }
0x11ac   :  { %v857_v26 = vmul.f32 %v1270_v22, %v855_v25 }
0x120f   :  { %v860_v23 = vpop.permute.xlu0 %859 }
0x1210   :  { %v862_v24 = vmul.f32 %v1270_v22, %v860_v23 }
0x1212   :  { %864 = vrot.lane.b32.xlu1 %v862_v24, %s1337_s3 }
0x1284   :  { %v865_v27 = vpop.permute.xlu1 %864 }
0x1285   :  { %v867_v28 = vadd.f32 %v865_v27, %v857_v26 }
0x1287   :  { %1271 = vtanh.f32 %v867_v28  ;;  %v962_v45 = vrot.slane %v867_v28, 7 }
0x1291   :  { %v1272_v29 = vpop.eup %1271 }
0x1292   :  { %870 = vrot.lane.b32.xlu0 %v1272_v29, %s1336_s16 }
0x1304   :  { %v871_v30 = vpop.permute.xlu0 %870 }
0x1305   :  { %v873_v31 = vmul.f32 %v1270_v22, %v871_v30 }
0x1307   :  { %v875_v32 = vrot.slane %v873_v31, 6 }
0x1309   :  { %876 = vrot.lane.b32.xlu1 %v875_v32, %s1337_s3 }
0x137b   :  { %v877_v33 = vpop.permute.xlu1 %876 }
0x137c   :  { %1152 = vmatmul.mubr.msk.f32.vlgmr.msra.gmra.mrb[8].mxu0 %vm57_vm1, %v877_v33 }
0x144f   :  { %v946_v34 = vpop.f32.mrb[8].mxu0 }
0x1450   :  { %v951_v35 = vrot.slane %v946_v34, 1  ;;  %v1153_v36 = vpop.f32.mrb[9].mxu0 }
0x1452   :  { %v953_v37 = vadd.f32 %v951_v35, %v1423_v17 }
0x1454   :  { %1273 = vtanh.f32 %v953_v37  ;;  %v1009_v39 = vmul.f32 -1.442695, %v953_v37 }
0x1456   :  { %1275 = vpow2.f32 %v1009_v39 }
0x145e   :  { %v1274_v38 = vpop.eup %1273 }
0x145f   :  { %966 = vrot.lane.b32.xlu0 %v1274_v38, %s1336_s16 }
0x1460   :  { %v1276_v40 = vpop.eup %1275 }
0x1461   :  { %v957_v41 = vadd.f32 1.0, %v1276_v40 }
0x1463   :  { %1277 = vrcp.f32 %v957_v41 }
0x146d   :  { %v1278_v42 = vpop.eup %1277 }
0x146e   :  { %v964_v46 = vmul.f32 %v1278_v42, %v962_v45 }
0x14d1   :  { %v967_v43 = vpop.permute.xlu0 %966 }
0x14d2   :  { %v969_v44 = vmul.f32 %v1278_v42, %v967_v43 }
0x14d4   :  { %971 = vrot.lane.b32.xlu1 %v969_v44, %s1337_s3 }
0x1546   :  { %v972_v47 = vpop.permute.xlu1 %971 }
0x1547   :  { %v974_v48 = vadd.f32 %v972_v47, %v964_v46 }
0x1549   :  { %1279 = vtanh.f32 %v974_v48 }
0x1553   :  { %v1280_v17 = vpop.eup %1279 }
0x1554   :  { %977 = vrot.lane.b32.xlu0 %v1280_v17, %s1336_s16 }
0x15c6   :  { %v978_v49 = vpop.permute.xlu0 %977 }
0x15c7   :  { %v980_v50 = vmul.f32 %v1278_v42, %v978_v49 }
0x15c9   :  { %982 = vrot.lane.b32.xlu1 %v980_v50, %s1337_s3 }
0x163b   :  { %v983_v51 = vpop.permute.xlu1 %982 }
0x163c   :  { %986 = vst.msk [vmem:[%s1507_s4 - $0x7] sm:$0x80] %vm985_vm2, %v983_v51 }
0x163d   :  { %991 = vsyncpa [#allocation3], 1 }
0x163e   :  { %992 = vsyncpa [#allocation5], 1 }

</bundles_post_ra>
